<compile_context>
chip_gen: v6e
topology: v6e:2x2x1
jax: 0.10.0
libtpu: 0.0.40
codegen_flags: <defaults>
</compile_context>

<pallas_src>
import functools

import jax
import jax.numpy as jnp
from jax.experimental import pallas as pl
from jax.experimental.pallas import tpu as pltpu


def _slice_kernel(x_ref, out_ref, *, starts, sizes):
    """out = x[s0:s0+n0, s1:s1+n1, s2:s2+n2] — pure static slice in VMEM."""
    s0, s1, s2 = starts
    n0, n1, n2 = sizes
    out_ref[...] = x_ref[s0:s0 + n0, s1:s1 + n1, s2:s2 + n2]


def slice_module_forward(x):
    """Pallas implementation of SliceModule.forward: x[0:5:1, 1:3:1, 2:4:1]."""
    dims = x.shape
    starts_raw = (0, 1, 2)
    ends_raw = (5, 3, 4)
    # PyTorch clamps both starts and ends to the dimension size.
    starts = tuple(min(s, d) for s, d in zip(starts_raw, dims))
    ends = tuple(min(e, d) for e, d in zip(ends_raw, dims))
    sizes = tuple(max(0, e - s) for s, e in zip(starts, ends))
    n0, n1, n2 = sizes
    assert n0 > 0 and n1 > 0 and n2 > 0, "empty slice not supported by this kernel"

    kernel = functools.partial(_slice_kernel, starts=starts, sizes=sizes)
    return pl.pallas_call(
        kernel,
        out_shape=jax.ShapeDtypeStruct((n0, n1, n2), x.dtype),
        # Whole-array specs: one contiguous auto-DMA in, one small store out.
        in_specs=[pl.BlockSpec(memory_space=pltpu.MemorySpace.VMEM)],
        out_specs=pl.BlockSpec(memory_space=pltpu.MemorySpace.VMEM),
    )(x)


if __name__ == "__main__":
    key = jax.random.PRNGKey(0)

    # Shape consistent with the torch-mlir e2e test for SliceModule: (6, 4, 7).
    x = jax.random.normal(key, (6, 4, 7), dtype=jnp.float32)

    out = slice_module_forward(x)
    out = jax.block_until_ready(out)

    # Reference: x[0:5:1, 1:3:1, 2:4:1]
    ref = x[0:5:1, 1:3:1, 2:4:1]
    assert out.shape == ref.shape and out.dtype == ref.dtype
    assert jnp.array_equal(out, ref), "Pallas slice mismatch vs reference"

    print("KERNEL_OK")
</pallas_src>

<mosaic_0001>
module attributes {stable_mosaic.version = 11 : i64} {
  func.func @_slice_kernel(%arg0: memref<6x4x7xf32, #tpu.memory_space<vmem>>, %arg1: memref<5x2x2xf32, #tpu.memory_space<vmem>>) attributes {dimension_semantics = [], scalar_prefetch = 0 : i64, scratch_operands = 0 : i64, tpu.core_type = #tpu.core_type<tc>} {
    %c0 = arith.constant 0 : index
    %c1 = arith.constant 1 : index
    %c2 = arith.constant 2 : index
    %0 = vector.load %arg0[%c0, %c1, %c2] : memref<6x4x7xf32, #tpu.memory_space<vmem>>, vector<5x2x2xf32>
    %c0_0 = arith.constant 0 : index
    %c0_1 = arith.constant 0 : index
    %c0_2 = arith.constant 0 : index
    %1 = vector.load %arg1[%c0_0, %c0_1, %c0_2] : memref<5x2x2xf32, #tpu.memory_space<vmem>>, vector<5x2x2xf32>
    tpu.vector_store %arg1[%c0_0, %c0_1, %c0_2], %0 {strides = array<i32>} : memref<5x2x2xf32, #tpu.memory_space<vmem>>, vector<5x2x2xf32>,
    return
  }
}

</mosaic_0001>

<bundles_post_ra>
// kernel: tpu_custom_call.1
= control target key start
LH: loop header
LB: loop body
LE: loop exit
PB: predicated region body
PF: predicated region fallthrough
CT: control target
= control target key end

     0   :  { %6 = vsyncpa [#allocation3], 0  ;;  %s84_s6 = smov [#allocation2]   ;;  %s116_s0 = inlined_call_operand.hbm [shape: f32[6,4,7], index: 0, kind: input, shape index: {}]   ;;  %s117_s1 = inlined_call_operand.vmem [shape: f32[5,2,2], index: 1, kind: output, shape index: {}]  }
   0x1   :  { %s12_s7 = sshll.u32 %s84_s6, 4  ;;  %s13_s7 = int_to_ptr.vmem [resolvable:$true] %s12_s7 }
   0x2   :  { %s70_s8 = scalar_lea.vmem %s13_s7, 384  ;;  %p75_p1 = scmp.lt.s32.totalorder %s13_s7, %s13_s7 }
   0x3   :  { %p71_p0 = scmp.ne.s32.totalorder %s13_s7, %s70_s8  ;;  %p76_p2 = scmp.lt.s32.totalorder %s70_s8, %s70_s8 }
   0x5   :  { %p77_p3 = por %p76_p2, %p75_p1 }
   0x7   :  { %p78_p4 = pnand %p77_p3, %p71_p0 }
   0x9   :  { %81 = shalt.err (!%p78_p4)
}
   0xa   :  { %s85_s9 = smov 64   ;;  %s86_s10 = smov 4  }
   0xb   :  { %18 = dma.hbm_to_vmem [thread:$0]  %s116_s0, 384, %s13_s7, [#allocation3], %s85_s9, %s85_s9, %s86_s10  }
   0xc   :  { %82 = dma.done.wait [#allocation3], 384  }
   0xd   :  { %83 = vsyncadd [#allocation3], 4294966912  ;;  %v22_v0 = vld [vmem:[#allocation2 + $0x1] sm:$0x3]  ;;  %v24_v1 = vld [vmem:[#allocation2 + $0x9] sm:$0x3] }
   0xe   :  { %s87_s13 = smov 126   ;;  %v23_v2 = vld [vmem:[#allocation2 + $0x5] sm:$0x3]  ;;  %v25_v3 = vld [vmem:[#allocation2 + $0xd] sm:$0x3]  ;;  %vm47_vm0 = vcmask 9216  }
   0xf   :  { %32 = vrot.lane.b32.xlu0 %v22_v0, %s87_s13  ;;  %36 = vrot.lane.b32.xlu1 %v24_v1, %s87_s13  ;;  %v26_v4 = vld [vmem:[#allocation2 + $0x11] sm:$0x3] }
  0x13   :  { %34 = vrot.lane.b32.xlu0 %v23_v2, %s87_s13  ;;  %38 = vrot.lane.b32.xlu1 %v25_v3, %s87_s13 }
  0x17   :  { %40 = vrot.lane.b32.xlu0 %v26_v4, %s87_s13 }
  0x81   :  { %v33_v5 = vpop.permute.xlu0 %32  ;;  %v37_v6 = vpop.permute.xlu1 %36 }
  0x82   :  { %48 = vst.msk [vmem:[%s117_s1] sm:$0x3] %vm47_vm0, %v33_v5  ;;  %50 = vst.msk [vmem:[%s117_s1 + $0x4] sm:$0x3] %vm47_vm0, %v37_v6 }
  0x85   :  { %v35_v7 = vpop.permute.xlu0 %34  ;;  %v39_v8 = vpop.permute.xlu1 %38 }
  0x86   :  { %49 = vst.msk [vmem:[%s117_s1 + $0x2] sm:$0x3] %vm47_vm0, %v35_v7  ;;  %51 = vst.msk [vmem:[%s117_s1 + $0x6] sm:$0x3] %vm47_vm0, %v39_v8 }
  0x89   :  { %v41_v9 = vpop.permute.xlu0 %40 }
  0x8a   :  { %52 = vst.msk [vmem:[%s117_s1 + $0x8] sm:$0x3] %vm47_vm0, %v41_v9 }
  0x8b   :  { %57 = vsyncpa [#allocation3], 1 }

</bundles_post_ra>
